<compile_context>
chip_gen: v7x
topology: tpu7x:2x2x1
jax: 0.10.0
libtpu: 0.0.40
codegen_flags: <defaults>
</compile_context>

<pallas_src>
import functools

import jax
import jax.numpy as jnp
from jax.experimental import pallas as pl
from jax.experimental.pallas import tpu as pltpu


def _round_up(x, m):
    return (x + m - 1) // m * m


def _vmem_limit_bytes(needed):
    """Generous scoped-VMEM request, clamped to the device's physical VMEM."""
    try:
        cap = int(pltpu.get_tpu_info().vmem_capacity_bytes)
    except Exception:
        cap = 64 * 1024 * 1024          # v7x per-TC VMEM (smallest of v5e/v6e/v7x)
    return int(min(max(2 * needed, 32 * 1024 * 1024), cap - 4 * 1024 * 1024))


# ---------------------------------------------------------------------------
# 3-D (multi-hot, mean-pooled) path: counts @ table on the MXU, V-blocked
# ---------------------------------------------------------------------------
def _pooled_kernel(idx_ref, emb_ref, out_ref, acc_ref):
    """One (row-tile, vocab-block) grid step of the mean-pooled embedding.

    idx_ref: (TN, K) int32 ids (same block for every vocab step)
    emb_ref: (Vb, Dp) table block kv (compute dtype; padded rows are zero)
    out_ref: (TN, Dp) output block (written at the last vocab step)
    acc_ref: (TN, Dp) f32 accumulator scratch
    """
    kv = pl.program_id(1)

    @pl.when(kv == 0)
    def _():
        acc_ref[...] = jnp.zeros_like(acc_ref)

    idx = idx_ref[...]                                   # (TN, K)
    emb = emb_ref[...]                                   # (Vb, Dp)
    TN, K = idx.shape
    Vb = emb.shape[0]

    # Per-row id counts over this vocab block.  K is tiny and static, so an
    # unrolled accumulation avoids a (TN, K, Vb) one-hot and any cross-sublane
    # reduce.  counts <= K, so accumulating directly in the (possibly bf16)
    # table dtype is exact and skips an extra full (TN, Vb) cast pass.
    iota = jax.lax.broadcasted_iota(jnp.int32, (TN, Vb), 1) + kv * Vb
    counts = (idx[:, 0:1] == iota).astype(emb.dtype)
    for k in range(1, K):                                # static unroll
        counts = counts + (idx[:, k:k + 1] == iota).astype(emb.dtype)

    # Fused gather+sum on the MXU.  Table row 0 is zero (padding_idx=0), so
    # id 0 contributes nothing to the sum.
    acc_ref[...] += jnp.dot(counts, emb, preferred_element_type=jnp.float32)

    @pl.when(kv == pl.num_programs(1) - 1)
    def _():
        denom = (idx > 0).sum(axis=-1, keepdims=True).astype(jnp.float32) + 1e-6
        # EUP approximate reciprocal only on the reduced-precision path; its
        # error is far below the bf16 table error (intentional, documented).
        approx = bool(emb.dtype != jnp.float32)
        out_ref[...] = (acc_ref[...] * pl.reciprocal(denom, approx=approx)
                        ).astype(out_ref.dtype)


# ---------------------------------------------------------------------------
# 2-D (plain lookup) path: batched row gather from a resident VMEM table
# ---------------------------------------------------------------------------
def _lookup_kernel(ids_ref, emb_ref, out_ref, *, rows_per_step):
    """ids_ref: SMEM (Np,) int32; emb_ref: (Vp, Dp) resident; out_ref: (G, Dp)."""
    base = pl.program_id(0) * rows_per_step
    for g in range(rows_per_step):                       # static unroll
        row = emb_ref[pl.ds(ids_ref[base + g], 1), :]    # dynamic row slice
        out_ref[pl.ds(g, 1), :] = row


# ---------------------------------------------------------------------------
# Module wrapper (table prep hoisted to setup time)
# ---------------------------------------------------------------------------
class CategoricalArticleEmbedding:
    """Pallas forward of the PyTorch CategoricalArticleEmbedding module."""

    def __init__(self, emb_table, *, compute_dtype=jnp.bfloat16,
                 tile_rows=256, vocab_block=1024, lookup_rows_per_step=32):
        V, D = emb_table.shape
        self.V, self.D = V, D
        self.out_dtype = emb_table.dtype

        # nn.Embedding(padding_idx=0): row 0 contributes zero.  Done ONCE here.
        emb_table = emb_table.at[0].set(0)

        Vp = _round_up(V, 128)
        Dp = _round_up(D, 128)
        if Vp <= vocab_block:
            Vb = Vp                                  # single vocab block
        else:
            Vb = _round_up(vocab_block, 256)         # MXU contraction depth (v6e/v7x)
            Vp = _round_up(Vp, Vb)
        self.Vp, self.Dp, self.Vb = Vp, Dp, Vb

        emb_pad = jnp.pad(emb_table, ((0, Vp - V), (0, Dp - D)))
        self.emb_lookup = emb_pad                        # exact-dtype table (2-D path)
        self.emb_pooled = emb_pad.astype(compute_dtype)  # MXU operand (3-D path)

        self.tile_rows = tile_rows
        self.lookup_rows_per_step = lookup_rows_per_step

    # ----- 3-D (multi-hot, mean-pooled) path -------------------------------
    def _pooled(self, idx2d):
        N, K = idx2d.shape
        Vp, Dp, Vb = self.Vp, self.Dp, self.Vb
        isz = self.emb_pooled.dtype.itemsize
        osz = jnp.dtype(self.out_dtype).itemsize

        TN = min(_round_up(self.tile_rows, 8), _round_up(N, 8))
        Np = _round_up(N, TN)
        if Np != N:
            # Padded rows are all-zero ids -> zero output; sliced off below.
            idx2d = jnp.pad(idx2d, ((0, Np - N), (0, 0)))

        needed = (2 * Vb * Dp * isz            # table blocks (double-buffered)
                  + 2 * TN * K * 4             # idx tiles
                  + 2 * TN * Dp * osz          # out tiles
                  + TN * Dp * 4                # f32 accumulator
                  + 3 * TN * Vb * isz)         # counts temporaries
        # TODO(synk): for very large vocabularies (V >> a few thousand) a
        # scalar-prefetch DMA-gather of the K rows per output row does
        # O(N*K*D) work instead of O(N*V*D) and needs no table blocks at all.

        out = pl.pallas_call(
            _pooled_kernel,
            out_shape=jax.ShapeDtypeStruct((Np, Dp), self.out_dtype),
            grid_spec=pltpu.PrefetchScalarGridSpec(
                num_scalar_prefetch=0,
                grid=(Np // TN, Vp // Vb),
                in_specs=[
                    pl.BlockSpec((TN, K), lambda i, kv: (i, 0)),    # id rows
                    pl.BlockSpec((Vb, Dp), lambda i, kv: (kv, 0)),  # table block
                ],
                out_specs=pl.BlockSpec((TN, Dp), lambda i, kv: (i, 0)),
                scratch_shapes=[pltpu.VMEM((TN, Dp), jnp.float32)],
            ),
            compiler_params=pltpu.CompilerParams(
                dimension_semantics=("parallel", "arbitrary"),
                vmem_limit_bytes=_vmem_limit_bytes(needed),
            ),
        )(idx2d, self.emb_pooled)
        return out[:N, :self.D]

    # ----- 2-D (plain lookup) path ------------------------------------------
    def _lookup(self, ids):
        N = ids.shape[0]
        Vp, Dp = self.Vp, self.Dp
        isz = self.emb_lookup.dtype.itemsize

        G = min(_round_up(self.lookup_rows_per_step, 8), _round_up(N, 8))
        Np = _round_up(N, G)
        if Np != N:
            ids = jnp.pad(ids, (0, Np - N))              # id 0 -> zero row

        needed = 2 * Vp * Dp * isz + 2 * G * Dp * isz
        # TODO(synk): for vocabularies where Vp*Dp no longer fits in VMEM, keep
        # the table in HBM (memory_space=pl.ANY) and pipeline per-row
        # make_async_copy gathers into a (G, Dp) scratch instead.

        out = pl.pallas_call(
            functools.partial(_lookup_kernel, rows_per_step=G),
            out_shape=jax.ShapeDtypeStruct((Np, Dp), self.out_dtype),
            grid_spec=pltpu.PrefetchScalarGridSpec(
                num_scalar_prefetch=1,                    # ids live in SMEM
                grid=(Np // G,),
                in_specs=[pl.BlockSpec((Vp, Dp), lambda i, ids_ref: (0, 0))],
                out_specs=pl.BlockSpec((G, Dp), lambda i, ids_ref: (i, 0)),
            ),
            compiler_params=pltpu.CompilerParams(
                dimension_semantics=("parallel",),        # distinct out block / step
                vmem_limit_bytes=_vmem_limit_bytes(needed),
            ),
        )(ids, self.emb_lookup)
        return out[:N, :self.D]

    def __call__(self, x):
        if x.ndim == 3:
            B, S, K = x.shape
            idx2d = x.reshape(B * S, K).astype(jnp.int32)
            return self._pooled(idx2d).reshape(B, S, self.D)
        ids = x.reshape(-1).astype(jnp.int32)
        return self._lookup(ids).reshape(*x.shape, self.D)


def _reference(x, emb_table):
    """Pure-JAX reference mirroring the PyTorch forward."""
    emb_table = emb_table.at[0].set(0)                 # padding_idx=0
    h = emb_table[x]                                   # (..., D)
    if x.ndim == 3:
        h = h.sum(axis=-2) / ((x > 0).sum(axis=-1, keepdims=True) + 1e-6)
    return h


if __name__ == "__main__":
    key = jax.random.PRNGKey(0)

    # Small shapes consistent with the module: vocab V, embedding dim D,
    # batch B, sequence S, K category ids per slot.
    V, D = 64, 128
    B, S, K = 2, 8, 4

    k_emb, k_idx = jax.random.split(key)

    # torch.nn.Embedding init ~ N(0,1); padding row handled inside the module.
    emb_table = jax.random.normal(k_emb, (V, D), dtype=jnp.float32)

    # Indices in [0, V); include some 0s (padding) naturally.
    x3 = jax.random.randint(k_idx, (B, S, K), 0, V, dtype=jnp.int32)
    x2 = x3[..., 0]

    module = CategoricalArticleEmbedding(emb_table)

    # 3-D (pooled) path — bf16 MXU operands, f32 accumulation, V-blocked.
    out3 = jax.block_until_ready(module(x3))
    # 2-D (plain lookup) path — batched row gather, exact f32.
    out2 = jax.block_until_ready(module(x2))

    ref3 = _reference(x3, emb_table)
    ref2 = _reference(x2, emb_table)

    assert out3.shape == (B, S, D) and out3.dtype == jnp.float32
    assert out2.shape == (B, S, D) and out2.dtype == jnp.float32
    # bf16 table operand + EUP approx reciprocal: ~4e-3 relative error budget.
    assert jnp.allclose(out3, ref3, atol=5e-2, rtol=5e-2), \
        float(jnp.max(jnp.abs(out3 - ref3)))
    # Gather path is an exact f32 lookup.
    assert jnp.allclose(out2, ref2, atol=1e-6, rtol=1e-6)

    print("KERNEL_OK")
</pallas_src>

<mosaic_0001>
module attributes {stable_mosaic.version = 11 : i64} {
  func.func @_pooled_kernel(%arg0: i32, %arg1: i32, %arg2: memref<16x4xi32, #tpu.memory_space<vmem>>, %arg3: memref<128x128xbf16, #tpu.memory_space<vmem>>, %arg4: memref<16x128xf32, #tpu.memory_space<vmem>>, %arg5: memref<16x128xf32, #tpu.memory_space<vmem>>) attributes {dimension_semantics = [#tpu.dimension_semantics<parallel>, #tpu.dimension_semantics<arbitrary>], iteration_bounds = array<i64: 1, 1>, scalar_prefetch = 0 : i64, scratch_operands = 1 : i64, tpu.core_type = #tpu.core_type<tc>, window_params = [{transform_indices = @transform_0, window_bounds = array<i64: 16, 4>}, {transform_indices = @transform_1, window_bounds = array<i64: 128, 128>}, {transform_indices = @transform_2, window_bounds = array<i64: 16, 128>}]} {
    %c0_i32 = arith.constant 0 : i32
    %0 = arith.cmpi eq, %arg1, %c0_i32 : i32
    %1 = arith.extui %0 : i1 to i32
    %c0_i32_0 = arith.constant 0 : i32
    %2 = arith.cmpi ne, %1, %c0_i32_0 : i32
    scf.if %2 {
      %cst_10 = arith.constant 0.000000e+00 : f32
      %43 = vector.broadcast %cst_10 : f32 to vector<16x128xf32>
      %c0_11 = arith.constant 0 : index
      %c0_12 = arith.constant 0 : index
      %44 = vector.load %arg5[%c0_11, %c0_12] : memref<16x128xf32, #tpu.memory_space<vmem>>, vector<16x128xf32>
      tpu.vector_store %arg5[%c0_11, %c0_12], %43 {strides = array<i32>} : memref<16x128xf32, #tpu.memory_space<vmem>>, vector<16x128xf32>,
    } else {
    }
    %c0 = arith.constant 0 : index
    %c0_1 = arith.constant 0 : index
    %3 = vector.load %arg2[%c0, %c0_1] : memref<16x4xi32, #tpu.memory_space<vmem>>, vector<16x4xi32>
    %c0_2 = arith.constant 0 : index
    %c0_3 = arith.constant 0 : index
    %4 = vector.load %arg3[%c0_2, %c0_3] : memref<128x128xbf16, #tpu.memory_space<vmem>>, vector<128x128xbf16>
    %5 = tpu.iota {dimensions = array<i32: 1>} : vector<16x128xi32>
    %c128_i32 = arith.constant 128 : i32
    %6 = arith.muli %arg1, %c128_i32 : i32
    %7 = vector.broadcast %6 : i32 to vector<16x128xi32>
    %8 = arith.addi %5, %7 : vector<16x128xi32>
    %9 = vector.extract_strided_slice %3 {offsets = [0, 0], sizes = [16, 1], strides = [1, 1]} : vector<16x4xi32> to vector<16x1xi32>
    %10 = vector.broadcast %9 : vector<16x1xi32> to vector<16x128xi32>
    %11 = arith.cmpi eq, %10, %8 : vector<16x128xi32>
    %12 = arith.extui %11 : vector<16x128xi1> to vector<16x128xi32>
    %13 = arith.sitofp %12 : vector<16x128xi32> to vector<16x128xf32>
    %14 = arith.truncf %13 : vector<16x128xf32> to vector<16x128xbf16>
    %15 = vector.extract_strided_slice %3 {offsets = [0, 1], sizes = [16, 1], strides = [1, 1]} : vector<16x4xi32> to vector<16x1xi32>
    %16 = vector.broadcast %15 : vector<16x1xi32> to vector<16x128xi32>
    %17 = arith.cmpi eq, %16, %8 : vector<16x128xi32>
    %18 = arith.extui %17 : vector<16x128xi1> to vector<16x128xi32>
    %19 = arith.sitofp %18 : vector<16x128xi32> to vector<16x128xf32>
    %20 = arith.truncf %19 : vector<16x128xf32> to vector<16x128xbf16>
    %21 = arith.addf %14, %20 : vector<16x128xbf16>
    %22 = vector.extract_strided_slice %3 {offsets = [0, 2], sizes = [16, 1], strides = [1, 1]} : vector<16x4xi32> to vector<16x1xi32>
    %23 = vector.broadcast %22 : vector<16x1xi32> to vector<16x128xi32>
    %24 = arith.cmpi eq, %23, %8 : vector<16x128xi32>
    %25 = arith.extui %24 : vector<16x128xi1> to vector<16x128xi32>
    %26 = arith.sitofp %25 : vector<16x128xi32> to vector<16x128xf32>
    %27 = arith.truncf %26 : vector<16x128xf32> to vector<16x128xbf16>
    %28 = arith.addf %21, %27 : vector<16x128xbf16>
    %29 = vector.extract_strided_slice %3 {offsets = [0, 3], sizes = [16, 1], strides = [1, 1]} : vector<16x4xi32> to vector<16x1xi32>
    %30 = vector.broadcast %29 : vector<16x1xi32> to vector<16x128xi32>
    %31 = arith.cmpi eq, %30, %8 : vector<16x128xi32>
    %32 = arith.extui %31 : vector<16x128xi1> to vector<16x128xi32>
    %33 = arith.sitofp %32 : vector<16x128xi32> to vector<16x128xf32>
    %34 = arith.truncf %33 : vector<16x128xf32> to vector<16x128xbf16>
    %35 = arith.addf %28, %34 : vector<16x128xbf16>
    %c0_4 = arith.constant 0 : index
    %c0_5 = arith.constant 0 : index
    %36 = vector.load %arg5[%c0_4, %c0_5] : memref<16x128xf32, #tpu.memory_space<vmem>>, vector<16x128xf32>
    %cst = arith.constant dense<0.000000e+00> : vector<16x128xf32>
    %37 = tpu.matmul %35, %4, %cst {dimension_numbers = #tpu.dot_dimension_numbers<[1], [0], [0], [1], [0, 0, 1, 1], [], []>} : vector<16x128xbf16>, vector<128x128xbf16>, vector<16x128xf32> -> vector<16x128xf32>
    %38 = arith.addf %36, %37 : vector<16x128xf32>
    %c0_6 = arith.constant 0 : index
    %c0_7 = arith.constant 0 : index
    %39 = vector.load %arg5[%c0_6, %c0_7] : memref<16x128xf32, #tpu.memory_space<vmem>>, vector<16x128xf32>
    tpu.vector_store %arg5[%c0_6, %c0_7], %38 {strides = array<i32>} : memref<16x128xf32, #tpu.memory_space<vmem>>, vector<16x128xf32>,
    %c0_i32_8 = arith.constant 0 : i32
    %40 = arith.cmpi eq, %arg1, %c0_i32_8 : i32
    %41 = arith.extui %40 : i1 to i32
    %c0_i32_9 = arith.constant 0 : i32
    %42 = arith.cmpi ne, %41, %c0_i32_9 : i32
    scf.if %42 {
      %c0_i32_10 = arith.constant 0 : i32
      %43 = vector.broadcast %c0_i32_10 : i32 to vector<16x4xi32>
      %44 = arith.cmpi sgt, %3, %43 : vector<16x4xi32>
      %45 = arith.extui %44 : vector<16x4xi1> to vector<16x4xi32>
      %cst_11 = arith.constant dense<0> : vector<16xi32>
      %46 = vector.multi_reduction <add>, %45, %cst_11 [1] : vector<16x4xi32> to vector<16xi32>
      %47 = vector.shape_cast %46 : vector<16xi32> to vector<16x1xi32>
      %48 = arith.sitofp %47 : vector<16x1xi32> to vector<16x1xf32>
      %cst_12 = arith.constant 9.99999997E-7 : f32
      %49 = vector.broadcast %cst_12 : f32 to vector<16x1xf32>
      %50 = arith.addf %48, %49 : vector<16x1xf32>
      %c0_13 = arith.constant 0 : index
      %c0_14 = arith.constant 0 : index
      %51 = vector.load %arg5[%c0_13, %c0_14] : memref<16x128xf32, #tpu.memory_space<vmem>>, vector<16x128xf32>
      %52 = tpu.reciprocal %50 {approx = true} : vector<16x1xf32> -> vector<16x1xf32>
      %53 = vector.broadcast %52 : vector<16x1xf32> to vector<16x128xf32>
      %54 = arith.mulf %51, %53 : vector<16x128xf32>
      %c0_15 = arith.constant 0 : index
      %c0_16 = arith.constant 0 : index
      %55 = vector.load %arg4[%c0_15, %c0_16] : memref<16x128xf32, #tpu.memory_space<vmem>>, vector<16x128xf32>
      tpu.vector_store %arg4[%c0_15, %c0_16], %54 {strides = array<i32>} : memref<16x128xf32, #tpu.memory_space<vmem>>, vector<16x128xf32>,
    } else {
    }
    return
  }
  func.func @transform_0(%arg0: i32, %arg1: i32) -> (i32, i32) {
    %c0_i32 = arith.constant 0 : i32
    %c0_i32_0 = arith.constant 0 : i32
    return %arg0, %c0_i32 : i32, i32
  }
  func.func @transform_1(%arg0: i32, %arg1: i32) -> (i32, i32) {
    %c0_i32 = arith.constant 0 : i32
    %c0_i32_0 = arith.constant 0 : i32
    return %arg1, %c0_i32 : i32, i32
  }
  func.func @transform_2(%arg0: i32, %arg1: i32) -> (i32, i32) {
    %c0_i32 = arith.constant 0 : i32
    %c0_i32_0 = arith.constant 0 : i32
    return %arg0, %c0_i32 : i32, i32
  }
}

</mosaic_0001>

<bundles_post_ra>
// kernel: tpu_custom_call.1
= control target key start
LH: loop header
LB: loop body
LE: loop exit
PB: predicated region body
PF: predicated region fallthrough
CT: control target
= control target key end

     0   :  { %7 = vsyncpa [#allocation4], 0  ;;  %s466_s0 = inlined_call_operand.vmem [shape: s32[16,4], index: 0, kind: input, shape index: {}]   ;;  %s467_s1 = inlined_call_operand.hbm [shape: bf16[128,128], index: 1, kind: input, shape index: {}]   ;;  %s468_s2 = inlined_call_operand.hbm [shape: f32[16,128], index: 2, kind: output, shape index: {}]  }
   0x1   :  { %8 = vsyncpa [#allocation5], 0  ;;  %s392_s9 = smov [#allocation3]   ;;  %s344_s13 = scalar_lea.hbm %s467_s1, 1024 }
   0x2   :  { %s16_s10 = sshll.u32 %s392_s9, 4  ;;  %p345_p0 = scmp.ne.s32.totalorder %s467_s1, %s344_s13  ;;  %s17_s10 = int_to_ptr.vmem [resolvable:$true] %s16_s10 }
   0x3   :  { %p348_p1 = scmp.lt.u32.totalorder %s344_s13, %s467_s1 }
   0x5   :  { %p350_p2 = pnand %p348_p1, %p345_p0 }
   0x7   :  { %353 = shalt.err (!%p350_p2)
}
   0x8   :  { %s354_s18 = scalar_lea.vmem %s17_s10, 1024  ;;  %p359_p4 = scmp.lt.s32.totalorder %s17_s10, %s17_s10 }
   0x9   :  { %p355_p3 = scmp.ne.s32.totalorder %s17_s10, %s354_s18  ;;  %p360_p5 = scmp.lt.s32.totalorder %s354_s18, %s354_s18 }
   0xb   :  { %p361_p6 = por %p360_p5, %p359_p4 }
   0xd   :  { %p362_p7 = pnand %p361_p6, %p355_p3 }
   0xf   :  { %365 = shalt.err (!%p362_p7)
}
  0x10   :  { %s393_s19 = smov 64   ;;  %s394_s20 = smov 4  }
  0x11   :  { %22 = dma.hbm_to_vmem [thread:$0]  %s467_s1, 1024, %s17_s10, [#allocation4], %s393_s19, %s393_s19, %s394_s20  }
  0x12   :  { %388 = dma.done.wait [#allocation4], 1024  }
  0x13   :  { %389 = vsyncadd [#allocation4], 4294966272  ;;  %v395_v0 = vmov 1   ;;  %v396_v1 = vmov 0   ;;  %v397_v2 = vmov 0.0   ;;  %v33_v3 = vld [vmem:[%s466_s0] sm:$0xff]  ;;  %v51_v27 = vlaneseq }
  0x14   :  { %327 = vset.pattern.permute.xlu1 %v395_v0  ;;  %326 = vset.pattern.permute.xlu0 %v396_v1  ;;  %v332_v4 = vld [vmem:[#allocation3] sm:$0xff]   ;;  %v34_v5 = vld [vmem:[%s466_s0 + $0x8] sm:$0xff]  ;;  %v334_v7 = vld [vmem:[#allocation3 + $0x10] sm:$0xff]   ;;  %v398_v8 = vmov 2   ;;  %v399_v10 = vmov 3   ;;  %vm400_vm0 = vmmov 0  }
  0x15   :  { %294 = vmatprep.subr.bf16.mxu0 %v397_v2  ;;  %70 = vperm.xlu1 %327, %v33_v3   ;;  %v333_v6 = vld [vmem:[#allocation3 + $0x8] sm:$0xff]   ;;  %v335_v9 = vld [vmem:[#allocation3 + $0x18] sm:$0xff]   ;;  %v336_v11 = vld [vmem:[#allocation3 + $0x20] sm:$0xff]   ;;  %vm210_vm1 = vcmp.gt.s32.totalorder %v34_v5, 0  ;;  %vm213_vm2 = vcmask 31744   ;;  %vm209_vm3 = vcmp.gt.s32.totalorder %v33_v3, 0 }
  0x16   :  { %57 = vperm.xlu0 %326, %v33_v3   ;;  %295 = vmatpush3.bf16.msra.mxu0 %v332_v4  ;;  %v337_v12 = vld [vmem:[#allocation3 + $0x28] sm:$0xff]   ;;  %v338_v13 = vld [vmem:[#allocation3 + $0x30] sm:$0xff]   ;;  %v339_v14 = vld [vmem:[#allocation3 + $0x38] sm:$0xff]   ;;  %v212_v15 = vsel %vm210_vm1, 1, %v396_v1  ;;  %v211_v17 = vsel %vm209_vm3, 1, %v396_v1  ;;  %v52_v30 = vand.u32 127, %v51_v27 }
  0x17   :  { %296 = vmatprep.subr.bf16.mxu0 %v397_v2  ;;  %310 = vmatprep.mubr.msk.bf16.mxu0 %vm400_vm0, %v397_v2  ;;  %v227_v16 = vsel %vm213_vm2, %v212_v15, 0  ;;  %v214_v19 = vsel %vm213_vm2, %v211_v17, 0  ;;  %s401_s0 = smov [#allocation6]  }
  0x18   :  { %v229_v18 = vshrl.u32 %v227_v16, 16  ;;  %v228_v21 = vand.u32 65535, %v227_v16  ;;  %v216_v22 = vshrl.u32 %v214_v19, 16  ;;  %v215_v25 = vand.u32 65535, %v214_v19  ;;  %s257_s1 = sshll.u32 %s401_s0, 4  ;;  %s258_s1 = int_to_ptr.vmem [resolvable:$true] %s257_s1 }
  0x19   :  { %73 = vperm.xlu1 %327, %v34_v5   ;;  %s366_s27 = scalar_lea.vmem %s258_s1, 256  ;;  %p371_p9 = scmp.lt.s32.totalorder %s258_s1, %s258_s1 }
  0x1a   :  { %60 = vperm.xlu0 %326, %v34_v5   ;;  %297 = vmatpush3.bf16.msra.mxu0 %v333_v6  ;;  %v231_v20 = vcvt.s32.f32 %v229_v18  ;;  %v230_v23 = vcvt.s32.f32 %v228_v21  ;;  %v218_v24 = vcvt.s32.f32 %v216_v22  ;;  %v217_v26 = vcvt.s32.f32 %v215_v25  ;;  %p367_p8 = scmp.ne.s32.totalorder %s258_s1, %s366_s27  ;;  %p372_p10 = scmp.lt.s32.totalorder %s366_s27, %s366_s27 }
  0x1b   :  { %298 = vmatprep.subr.bf16.mxu0 %v397_v2 }
  0x1c   :  { %p373_p11 = por %p372_p10, %p371_p9 }
  0x1d   :  { %329 = vset.pattern.permute.xlu1 %v398_v8 }
  0x1e   :  { %328 = vset.pattern.permute.xlu0 %v398_v8  ;;  %87 = vperm.xlu1 %329, %v34_v5   ;;  %p374_p12 = pnand %p373_p11, %p367_p8 }
  0x1f   :  { %84 = vperm.xlu0 %328, %v33_v3   ;;  %299 = vmatpush3.bf16.msra.mxu0 %v334_v7 }
  0x20   :  { %300 = vmatprep.subr.bf16.mxu0 %v397_v2 }
  0x22   :  { %330 = vset.pattern.permute.xlu1 %v399_v10 }
  0x23   :  { %331 = vset.pattern.permute.xlu0 %v399_v10  ;;  %98 = vperm.xlu1 %330, %v33_v3  }
  0x24   :  { %101 = vperm.xlu0 %331, %v34_v5   ;;  %301 = vmatpush3.bf16.msra.mxu0 %v335_v9 }
  0x25   :  { %302 = vmatprep.subr.bf16.mxu0 %v397_v2 }
  0x28   :  { %303 = vmatpush3.bf16.msra.mxu0 %v336_v11 }
  0x29   :  { %304 = vmatprep.subr.bf16.mxu0 %v397_v2 }
  0x2c   :  { %305 = vmatpush3.bf16.msra.mxu0 %v337_v12 }
  0x2d   :  { %306 = vmatprep.subr.bf16.mxu0 %v397_v2 }
  0x30   :  { %307 = vmatpush3.bf16.msra.mxu0 %v338_v13 }
  0x31   :  { %308 = vmatprep.subr.bf16.mxu0 %v397_v2 }
  0x34   :  { %309 = vmatpush3.bf16.msra.mxu0 %v339_v14 }
  0x43   :  { %234 = vadd.xlane.f32.xlu0 %v231_v20 }
  0x47   :  { %232 = vadd.xlane.f32.xlu0 %v230_v23  ;;  %221 = vadd.xlane.f32.xlu1 %v218_v24 }
  0x4b   :  { %219 = vadd.xlane.f32.xlu1 %v217_v26 }
  0x94   :  { %v71_v28 = vpop.permute.xlu1 %70 }
  0x95   :  { %v58_v29 = vpop.permute.xlu0 %57  ;;  %vm75_vm6 = vcmp.eq.s32.totalorder %v71_v28, %v52_v30 }
  0x96   :  { %vm62_vm7 = vcmp.eq.s32.totalorder %v58_v29, %v52_v30  ;;  %v271_v37 = vsel %vm75_vm6, 1.0, %v397_v2 }
  0x97   :  { %v269_v38 = vsel %vm62_vm7, 1.0, %v397_v2 }
  0x98   :  { %v74_v31 = vpop.permute.xlu1 %73 }
  0x99   :  { %v61_v32 = vpop.permute.xlu0 %60  ;;  %vm76_vm4 = vcmp.eq.s32.totalorder %v74_v31, %v52_v30 }
  0x9a   :  { %vm63_vm5 = vcmp.eq.s32.totalorder %v61_v32, %v52_v30  ;;  %v272_v33 = vsel %vm76_vm4, 1.0, %v397_v2 }
  0x9b   :  { %v270_v34 = vsel %vm63_vm5, 1.0, %v397_v2  ;;  %v81_v39 = vpack.c.bf16 %v272_v33, %v271_v37 }
  0x9c   :  { %v68_v40 = vpack.c.bf16 %v270_v34, %v269_v38 }
  0x9d   :  { %v88_v35 = vpop.permute.xlu1 %87 }
  0x9e   :  { %v85_v36 = vpop.permute.xlu0 %84  ;;  %vm90_vm8 = vcmp.eq.s32.totalorder %v88_v35, %v52_v30  ;;  %v82_v46 = vadd.bf16 %v81_v39, %v68_v40 }
  0x9f   :  { %vm89_vm9 = vcmp.eq.s32.totalorder %v85_v36, %v52_v30  ;;  %v274_v41 = vsel %vm90_vm8, 1.0, %v397_v2 }
  0xa0   :  { %v273_v42 = vsel %vm89_vm9, 1.0, %v397_v2 }
  0xa1   :  { %v95_v43 = vpack.c.bf16 %v274_v41, %v273_v42 }
  0xa2   :  { %v99_v44 = vpop.permute.xlu1 %98 }
  0xa3   :  { %v102_v45 = vpop.permute.xlu0 %101  ;;  %vm103_vm10 = vcmp.eq.s32.totalorder %v99_v44, %v52_v30  ;;  %v96_v49 = vadd.bf16 %v95_v43, %v82_v46 }
  0xa4   :  { %vm104_vm11 = vcmp.eq.s32.totalorder %v102_v45, %v52_v30  ;;  %v275_v47 = vsel %vm103_vm10, 1.0, %v397_v2 }
  0xa5   :  { %v276_v48 = vsel %vm104_vm11, 1.0, %v397_v2 }
  0xa6   :  { %v109_v50 = vpack.c.bf16 %v276_v48, %v275_v47 }
  0xa8   :  { %v110_v51 = vadd.bf16 %v109_v50, %v96_v49 }
  0xaa   :  { %311 = vmatmul.mubr.bf16.vlgmr.msra.gmra.mrb[0].mxu0 %v110_v51 }
  0xd0   :  { %v235_v53 = vpop.xlane.xlu0 %234 }
  0xd1   :  { %v237_v56 = vcvt.f32.s32 %v235_v53 }
  0xd3   :  { %v238_v60 = vshll.u32 %v237_v56, 16 }
  0xd4   :  { %v222_v52 = vpop.xlane.xlu1 %221  ;;  %v233_v59 = vpop.xlane.xlu0 %232 }
  0xd5   :  { %v224_v54 = vcvt.f32.s32 %v222_v52  ;;  %v236_v61 = vcvt.f32.s32 %v233_v59 }
  0xd7   :  { %v225_v57 = vshll.u32 %v224_v54, 16  ;;  %v239_v63 = vadd.s32 %v238_v60, %v236_v61 }
  0xd8   :  { %v220_v55 = vpop.xlane.xlu1 %219 }
  0xd9   :  { %v223_v58 = vcvt.f32.s32 %v220_v55  ;;  %v241_v1 = vcvt.s32.f32 %v239_v63 }
  0xdb   :  { %v226_v62 = vadd.s32 %v225_v57, %v223_v58  ;;  %v243_v2 = vadd.f32 1e-06, %v241_v1 }
  0xdd   :  { %v240_v0 = vcvt.s32.f32 %v226_v62 }
  0xdf   :  { %v242_v3 = vadd.f32 1e-06, %v240_v0 }
  0xe1   :  { %340 = vrcp.f32 %v242_v3 }
  0xe2   :  { %342 = vrcp.f32 %v243_v2 }
  0xeb   :  { %v341_v4 = vpop.eup %340 }
  0xec   :  { %v343_v8 = vpop.eup %342 }
 0x17d   :  { %v195_v5 = vpop.f32.mrb[0].mxu0 }
 0x17e   :  { %v248_v6 = vmul.f32 %v341_v4, %v195_v5  ;;  %v312_v7 = vpop.f32.mrb[1].mxu0 }
 0x17f   :  { %v198_v9 = vpop.f32.mrb[2].mxu0 }
 0x180   :  { %250 = vst [vmem:[#allocation6] sm:$0xff] %v248_v6  ;;  %v249_v10 = vmul.f32 %v343_v8, %v198_v9  ;;  %v313_v11 = vpop.f32.mrb[3].mxu0 }
 0x182   :  { %251 = vst [vmem:[#allocation6 + $0x8] sm:$0xff] %v249_v10 }
 0x183   :  { %377 = shalt.err (!%p374_p12)
}
 0x184   :  { %s378_s30 = scalar_lea.hbm %s468_s2, 256 }
 0x185   :  { %p379_p13 = scmp.ne.s32.totalorder %s468_s2, %s378_s30  ;;  %p382_p0 = scmp.lt.u32.totalorder %s378_s30, %s468_s2 }
 0x187   :  { %p384_p1 = pnand %p382_p0, %p379_p13 }
 0x189   :  { %387 = shalt.err (!%p384_p1)
}
 0x18a   :  { %s402_s7 = smov 128   ;;  %s403_s8 = smov 8  }
 0x18b   :  { %263 = dma.vmem_to_hbm [thread:$0]  %s258_s1, 256, %s468_s2, [#allocation5], %s402_s7, %s402_s7, %s403_s8  }
 0x18c   :  { %390 = dma.done.wait [#allocation5], 256  }
 0x18d   :  { %391 = vsyncadd [#allocation5], 4294967040 }
 0x18e   :  { %267 = vsyncpa [#allocation4], 1 }
 0x18f   :  { %268 = vsyncpa [#allocation5], 1 }

</bundles_post_ra>
